<compile_context>
chip_gen: v6e
topology: v6e:2x2x1
jax: 0.10.0
libtpu: 0.0.40
codegen_flags: <defaults>
</compile_context>

<pallas_src>
import jax
import jax.numpy as jnp
from jax.experimental import pallas as pl
from jax.experimental.pallas import tpu as pltpu


def simple_nn_kernel(w1_ref, b1_ref, w2_ref, b2_ref, xt_ref, o_ref):
    """One batch tile.

    xt_ref : (8, TB) f32 VMEM — features on sublanes (rows 0..in_f-1), batch on lanes.
    w1_ref : (H, in_f) f32 SMEM   (PyTorch fc1.weight layout)
    b1_ref : (1, H)    f32 SMEM
    w2_ref : (1, H)    f32 SMEM   (PyTorch fc2.weight flattened)
    b2_ref : (1, 1)    f32 SMEM
    o_ref  : (1, TB)   f32 VMEM — lane-dense output row.
    """
    hidden, in_f = w1_ref.shape

    # Hoist the feature rows once; each is a lane-dense (1, TB) vector.
    x_rows = [xt_ref[k:k + 1, :] for k in range(in_f)]

    y = jnp.zeros(o_ref.shape, dtype=jnp.float32)            # (1, TB)
    for j in range(hidden):
        # fc1 row j:  h_j = sum_k w1[j, k] * x[k, :]  (scalar * vector FMAs on the VPU)
        h_j = x_rows[0] * w1_ref[j, 0]
        for k in range(1, in_f):
            h_j = h_j + x_rows[k] * w1_ref[j, k]
        h_j = jnp.maximum(h_j + b1_ref[0, j], 0.0)            # + bias, ReLU
        # fc2 (H -> 1) folded into the same pass: y += w2[j] * h_j
        y = y + h_j * w2_ref[0, j]

    y = y + b2_ref[0, 0]
    # Sigmoid: exp / divide hit the EUP slot (effectively free next to the VPU work).
    o_ref[...] = 1.0 / (1.0 + jnp.exp(-y))


def _round_up(n, m):
    return ((n + m - 1) // m) * m


def simple_nn_forward(x, w1, b1, w2, b2, *, batch_tile=1024):
    """Forward pass of SimpleNN.

    Accepts PyTorch-layout parameters:
      x : (B, 5) float32
      w1: (hidden, 5)  = fc1.weight     b1: (hidden,) = fc1.bias
      w2: (1, hidden)  = fc2.weight     b2: (1,)      = fc2.bias
    Returns (B, 1) float32, matching the PyTorch forward.
    """
    x = x.astype(jnp.float32)
    B, in_f = x.shape
    hidden = w1.shape[0]

    # Batch goes on the 128-lane axis; tile it for the grid.
    tb = min(batch_tile, _round_up(B, 128))
    bp = _round_up(B, tb)
    in_pad = _round_up(in_f, 8)                 # sublane-friendly row count

    # Layout plumbing (cheap, mem-bound): x -> xT, zero-padded to (8, bp).
    xt = jnp.zeros((in_pad, bp), jnp.float32).at[:in_f, :B].set(x.T)

    # Tiny parameters -> 2-D SMEM scalars, resident across all grid steps.
    w1_s = w1.astype(jnp.float32)                              # (hidden, in_f)
    b1_s = b1.reshape(1, hidden).astype(jnp.float32)
    w2_s = w2.reshape(1, hidden).astype(jnp.float32)
    b2_s = b2.reshape(1, 1).astype(jnp.float32)

    smem = pl.BlockSpec(memory_space=pltpu.MemorySpace.SMEM)

    out = pl.pallas_call(
        simple_nn_kernel,
        out_shape=jax.ShapeDtypeStruct((1, bp), jnp.float32),
        grid=(bp // tb,),
        in_specs=[
            smem,                                              # w1 (SMEM, resident)
            smem,                                              # b1
            smem,                                              # w2
            smem,                                              # b2
            pl.BlockSpec((in_pad, tb), lambda i: (0, i)),      # xT batch tile (VMEM)
        ],
        out_specs=pl.BlockSpec((1, tb), lambda i: (0, i)),     # lane-dense output row
        compiler_params=pltpu.CompilerParams(
            dimension_semantics=("parallel",)),                # megacore-shardable on v7x
    )(w1_s, b1_s, w2_s, b2_s, xt)

    return out[0, :B].reshape(B, 1)


if __name__ == "__main__":
    in_features = 5
    num_features = 5            # hidden width (PyTorch ctor arg: numFeatures)
    batch = 200                 # small, but exercises batch padding + a 2-step grid

    key = jax.random.PRNGKey(0)
    kx, kw1, kb1, kw2, kb2 = jax.random.split(key, 5)

    x = jax.random.normal(kx, (batch, in_features), dtype=jnp.float32)
    # Deterministic synthetic parameters in PyTorch layouts.
    w1 = jax.random.normal(kw1, (num_features, in_features), dtype=jnp.float32) * 0.3
    b1 = jax.random.normal(kb1, (num_features,), dtype=jnp.float32) * 0.3
    w2 = jax.random.normal(kw2, (1, num_features), dtype=jnp.float32) * 0.3
    b2 = jax.random.normal(kb2, (1,), dtype=jnp.float32) * 0.3

    out = simple_nn_forward(x, w1, b1, w2, b2, batch_tile=128)
    jax.block_until_ready(out)

    # Plain-JAX reference of the identical forward pass.
    h = jnp.maximum(x @ w1.T + b1, 0.0)
    ref = 1.0 / (1.0 + jnp.exp(-(h @ w2.T + b2)))
    assert out.shape == (batch, 1)
    assert jnp.allclose(out, ref, atol=1e-5, rtol=1e-5), "mismatch vs reference"

    print("KERNEL_OK")
</pallas_src>

<mosaic_0001>
module attributes {stable_mosaic.version = 11 : i64} {
  func.func @simple_nn_kernel(%arg0: i32, %arg1: memref<5x5xf32, #tpu.memory_space<smem>>, %arg2: memref<1x5xf32, #tpu.memory_space<smem>>, %arg3: memref<1x5xf32, #tpu.memory_space<smem>>, %arg4: memref<1x1xf32, #tpu.memory_space<smem>>, %arg5: memref<8x128xf32, #tpu.memory_space<vmem>>, %arg6: memref<1x128xf32, #tpu.memory_space<vmem>>) attributes {dimension_semantics = [#tpu.dimension_semantics<parallel>], iteration_bounds = array<i64: 2>, scalar_prefetch = 0 : i64, scratch_operands = 0 : i64, tpu.core_type = #tpu.core_type<tc>, window_params = [{transform_indices = @transform_0, window_bounds = array<i64: 5, 5>}, {transform_indices = @transform_1, window_bounds = array<i64: 1, 5>}, {transform_indices = @transform_2, window_bounds = array<i64: 1, 5>}, {transform_indices = @transform_3, window_bounds = array<i64: 1, 1>}, {transform_indices = @transform_4, window_bounds = array<i64: 8, 128>}, {transform_indices = @transform_5, window_bounds = array<i64: 1, 128>}]} {
    %c0 = arith.constant 0 : index
    %c0_0 = arith.constant 0 : index
    %0 = vector.load %arg5[%c0, %c0_0] : memref<8x128xf32, #tpu.memory_space<vmem>>, vector<1x128xf32>
    %c1 = arith.constant 1 : index
    %c0_1 = arith.constant 0 : index
    %1 = vector.load %arg5[%c1, %c0_1] : memref<8x128xf32, #tpu.memory_space<vmem>>, vector<1x128xf32>
    %c2 = arith.constant 2 : index
    %c0_2 = arith.constant 0 : index
    %2 = vector.load %arg5[%c2, %c0_2] : memref<8x128xf32, #tpu.memory_space<vmem>>, vector<1x128xf32>
    %c3 = arith.constant 3 : index
    %c0_3 = arith.constant 0 : index
    %3 = vector.load %arg5[%c3, %c0_3] : memref<8x128xf32, #tpu.memory_space<vmem>>, vector<1x128xf32>
    %c4 = arith.constant 4 : index
    %c0_4 = arith.constant 0 : index
    %4 = vector.load %arg5[%c4, %c0_4] : memref<8x128xf32, #tpu.memory_space<vmem>>, vector<1x128xf32>
    %cst = arith.constant 0.000000e+00 : f32
    %5 = vector.broadcast %cst : f32 to vector<1x128xf32>
    %c0_5 = arith.constant 0 : index
    %c0_6 = arith.constant 0 : index
    %6 = memref.load %arg1[%c0_5, %c0_6] : memref<5x5xf32, #tpu.memory_space<smem>>
    %7 = vector.broadcast %6 : f32 to vector<1x128xf32>
    %8 = arith.mulf %0, %7 : vector<1x128xf32>
    %c0_7 = arith.constant 0 : index
    %c1_8 = arith.constant 1 : index
    %9 = memref.load %arg1[%c0_7, %c1_8] : memref<5x5xf32, #tpu.memory_space<smem>>
    %10 = vector.broadcast %9 : f32 to vector<1x128xf32>
    %11 = arith.mulf %1, %10 : vector<1x128xf32>
    %12 = arith.addf %8, %11 : vector<1x128xf32>
    %c0_9 = arith.constant 0 : index
    %c2_10 = arith.constant 2 : index
    %13 = memref.load %arg1[%c0_9, %c2_10] : memref<5x5xf32, #tpu.memory_space<smem>>
    %14 = vector.broadcast %13 : f32 to vector<1x128xf32>
    %15 = arith.mulf %2, %14 : vector<1x128xf32>
    %16 = arith.addf %12, %15 : vector<1x128xf32>
    %c0_11 = arith.constant 0 : index
    %c3_12 = arith.constant 3 : index
    %17 = memref.load %arg1[%c0_11, %c3_12] : memref<5x5xf32, #tpu.memory_space<smem>>
    %18 = vector.broadcast %17 : f32 to vector<1x128xf32>
    %19 = arith.mulf %3, %18 : vector<1x128xf32>
    %20 = arith.addf %16, %19 : vector<1x128xf32>
    %c0_13 = arith.constant 0 : index
    %c4_14 = arith.constant 4 : index
    %21 = memref.load %arg1[%c0_13, %c4_14] : memref<5x5xf32, #tpu.memory_space<smem>>
    %22 = vector.broadcast %21 : f32 to vector<1x128xf32>
    %23 = arith.mulf %4, %22 : vector<1x128xf32>
    %24 = arith.addf %20, %23 : vector<1x128xf32>
    %c0_15 = arith.constant 0 : index
    %c0_16 = arith.constant 0 : index
    %25 = memref.load %arg2[%c0_15, %c0_16] : memref<1x5xf32, #tpu.memory_space<smem>>
    %26 = vector.broadcast %25 : f32 to vector<1x128xf32>
    %27 = arith.addf %24, %26 : vector<1x128xf32>
    %cst_17 = arith.constant 0.000000e+00 : f32
    %28 = vector.broadcast %cst_17 : f32 to vector<1x128xf32>
    %29 = arith.maximumf %27, %28 : vector<1x128xf32>
    %c0_18 = arith.constant 0 : index
    %c0_19 = arith.constant 0 : index
    %30 = memref.load %arg3[%c0_18, %c0_19] : memref<1x5xf32, #tpu.memory_space<smem>>
    %31 = vector.broadcast %30 : f32 to vector<1x128xf32>
    %32 = arith.mulf %29, %31 : vector<1x128xf32>
    %33 = arith.addf %5, %32 : vector<1x128xf32>
    %c1_20 = arith.constant 1 : index
    %c0_21 = arith.constant 0 : index
    %34 = memref.load %arg1[%c1_20, %c0_21] : memref<5x5xf32, #tpu.memory_space<smem>>
    %35 = vector.broadcast %34 : f32 to vector<1x128xf32>
    %36 = arith.mulf %0, %35 : vector<1x128xf32>
    %c1_22 = arith.constant 1 : index
    %c1_23 = arith.constant 1 : index
    %37 = memref.load %arg1[%c1_22, %c1_23] : memref<5x5xf32, #tpu.memory_space<smem>>
    %38 = vector.broadcast %37 : f32 to vector<1x128xf32>
    %39 = arith.mulf %1, %38 : vector<1x128xf32>
    %40 = arith.addf %36, %39 : vector<1x128xf32>
    %c1_24 = arith.constant 1 : index
    %c2_25 = arith.constant 2 : index
    %41 = memref.load %arg1[%c1_24, %c2_25] : memref<5x5xf32, #tpu.memory_space<smem>>
    %42 = vector.broadcast %41 : f32 to vector<1x128xf32>
    %43 = arith.mulf %2, %42 : vector<1x128xf32>
    %44 = arith.addf %40, %43 : vector<1x128xf32>
    %c1_26 = arith.constant 1 : index
    %c3_27 = arith.constant 3 : index
    %45 = memref.load %arg1[%c1_26, %c3_27] : memref<5x5xf32, #tpu.memory_space<smem>>
    %46 = vector.broadcast %45 : f32 to vector<1x128xf32>
    %47 = arith.mulf %3, %46 : vector<1x128xf32>
    %48 = arith.addf %44, %47 : vector<1x128xf32>
    %c1_28 = arith.constant 1 : index
    %c4_29 = arith.constant 4 : index
    %49 = memref.load %arg1[%c1_28, %c4_29] : memref<5x5xf32, #tpu.memory_space<smem>>
    %50 = vector.broadcast %49 : f32 to vector<1x128xf32>
    %51 = arith.mulf %4, %50 : vector<1x128xf32>
    %52 = arith.addf %48, %51 : vector<1x128xf32>
    %c0_30 = arith.constant 0 : index
    %c1_31 = arith.constant 1 : index
    %53 = memref.load %arg2[%c0_30, %c1_31] : memref<1x5xf32, #tpu.memory_space<smem>>
    %54 = vector.broadcast %53 : f32 to vector<1x128xf32>
    %55 = arith.addf %52, %54 : vector<1x128xf32>
    %cst_32 = arith.constant 0.000000e+00 : f32
    %56 = vector.broadcast %cst_32 : f32 to vector<1x128xf32>
    %57 = arith.maximumf %55, %56 : vector<1x128xf32>
    %c0_33 = arith.constant 0 : index
    %c1_34 = arith.constant 1 : index
    %58 = memref.load %arg3[%c0_33, %c1_34] : memref<1x5xf32, #tpu.memory_space<smem>>
    %59 = vector.broadcast %58 : f32 to vector<1x128xf32>
    %60 = arith.mulf %57, %59 : vector<1x128xf32>
    %61 = arith.addf %33, %60 : vector<1x128xf32>
    %c2_35 = arith.constant 2 : index
    %c0_36 = arith.constant 0 : index
    %62 = memref.load %arg1[%c2_35, %c0_36] : memref<5x5xf32, #tpu.memory_space<smem>>
    %63 = vector.broadcast %62 : f32 to vector<1x128xf32>
    %64 = arith.mulf %0, %63 : vector<1x128xf32>
    %c2_37 = arith.constant 2 : index
    %c1_38 = arith.constant 1 : index
    %65 = memref.load %arg1[%c2_37, %c1_38] : memref<5x5xf32, #tpu.memory_space<smem>>
    %66 = vector.broadcast %65 : f32 to vector<1x128xf32>
    %67 = arith.mulf %1, %66 : vector<1x128xf32>
    %68 = arith.addf %64, %67 : vector<1x128xf32>
    %c2_39 = arith.constant 2 : index
    %c2_40 = arith.constant 2 : index
    %69 = memref.load %arg1[%c2_39, %c2_40] : memref<5x5xf32, #tpu.memory_space<smem>>
    %70 = vector.broadcast %69 : f32 to vector<1x128xf32>
    %71 = arith.mulf %2, %70 : vector<1x128xf32>
    %72 = arith.addf %68, %71 : vector<1x128xf32>
    %c2_41 = arith.constant 2 : index
    %c3_42 = arith.constant 3 : index
    %73 = memref.load %arg1[%c2_41, %c3_42] : memref<5x5xf32, #tpu.memory_space<smem>>
    %74 = vector.broadcast %73 : f32 to vector<1x128xf32>
    %75 = arith.mulf %3, %74 : vector<1x128xf32>
    %76 = arith.addf %72, %75 : vector<1x128xf32>
    %c2_43 = arith.constant 2 : index
    %c4_44 = arith.constant 4 : index
    %77 = memref.load %arg1[%c2_43, %c4_44] : memref<5x5xf32, #tpu.memory_space<smem>>
    %78 = vector.broadcast %77 : f32 to vector<1x128xf32>
    %79 = arith.mulf %4, %78 : vector<1x128xf32>
    %80 = arith.addf %76, %79 : vector<1x128xf32>
    %c0_45 = arith.constant 0 : index
    %c2_46 = arith.constant 2 : index
    %81 = memref.load %arg2[%c0_45, %c2_46] : memref<1x5xf32, #tpu.memory_space<smem>>
    %82 = vector.broadcast %81 : f32 to vector<1x128xf32>
    %83 = arith.addf %80, %82 : vector<1x128xf32>
    %cst_47 = arith.constant 0.000000e+00 : f32
    %84 = vector.broadcast %cst_47 : f32 to vector<1x128xf32>
    %85 = arith.maximumf %83, %84 : vector<1x128xf32>
    %c0_48 = arith.constant 0 : index
    %c2_49 = arith.constant 2 : index
    %86 = memref.load %arg3[%c0_48, %c2_49] : memref<1x5xf32, #tpu.memory_space<smem>>
    %87 = vector.broadcast %86 : f32 to vector<1x128xf32>
    %88 = arith.mulf %85, %87 : vector<1x128xf32>
    %89 = arith.addf %61, %88 : vector<1x128xf32>
    %c3_50 = arith.constant 3 : index
    %c0_51 = arith.constant 0 : index
    %90 = memref.load %arg1[%c3_50, %c0_51] : memref<5x5xf32, #tpu.memory_space<smem>>
    %91 = vector.broadcast %90 : f32 to vector<1x128xf32>
    %92 = arith.mulf %0, %91 : vector<1x128xf32>
    %c3_52 = arith.constant 3 : index
    %c1_53 = arith.constant 1 : index
    %93 = memref.load %arg1[%c3_52, %c1_53] : memref<5x5xf32, #tpu.memory_space<smem>>
    %94 = vector.broadcast %93 : f32 to vector<1x128xf32>
    %95 = arith.mulf %1, %94 : vector<1x128xf32>
    %96 = arith.addf %92, %95 : vector<1x128xf32>
    %c3_54 = arith.constant 3 : index
    %c2_55 = arith.constant 2 : index
    %97 = memref.load %arg1[%c3_54, %c2_55] : memref<5x5xf32, #tpu.memory_space<smem>>
    %98 = vector.broadcast %97 : f32 to vector<1x128xf32>
    %99 = arith.mulf %2, %98 : vector<1x128xf32>
    %100 = arith.addf %96, %99 : vector<1x128xf32>
    %c3_56 = arith.constant 3 : index
    %c3_57 = arith.constant 3 : index
    %101 = memref.load %arg1[%c3_56, %c3_57] : memref<5x5xf32, #tpu.memory_space<smem>>
    %102 = vector.broadcast %101 : f32 to vector<1x128xf32>
    %103 = arith.mulf %3, %102 : vector<1x128xf32>
    %104 = arith.addf %100, %103 : vector<1x128xf32>
    %c3_58 = arith.constant 3 : index
    %c4_59 = arith.constant 4 : index
    %105 = memref.load %arg1[%c3_58, %c4_59] : memref<5x5xf32, #tpu.memory_space<smem>>
    %106 = vector.broadcast %105 : f32 to vector<1x128xf32>
    %107 = arith.mulf %4, %106 : vector<1x128xf32>
    %108 = arith.addf %104, %107 : vector<1x128xf32>
    %c0_60 = arith.constant 0 : index
    %c3_61 = arith.constant 3 : index
    %109 = memref.load %arg2[%c0_60, %c3_61] : memref<1x5xf32, #tpu.memory_space<smem>>
    %110 = vector.broadcast %109 : f32 to vector<1x128xf32>
    %111 = arith.addf %108, %110 : vector<1x128xf32>
    %cst_62 = arith.constant 0.000000e+00 : f32
    %112 = vector.broadcast %cst_62 : f32 to vector<1x128xf32>
    %113 = arith.maximumf %111, %112 : vector<1x128xf32>
    %c0_63 = arith.constant 0 : index
    %c3_64 = arith.constant 3 : index
    %114 = memref.load %arg3[%c0_63, %c3_64] : memref<1x5xf32, #tpu.memory_space<smem>>
    %115 = vector.broadcast %114 : f32 to vector<1x128xf32>
    %116 = arith.mulf %113, %115 : vector<1x128xf32>
    %117 = arith.addf %89, %116 : vector<1x128xf32>
    %c4_65 = arith.constant 4 : index
    %c0_66 = arith.constant 0 : index
    %118 = memref.load %arg1[%c4_65, %c0_66] : memref<5x5xf32, #tpu.memory_space<smem>>
    %119 = vector.broadcast %118 : f32 to vector<1x128xf32>
    %120 = arith.mulf %0, %119 : vector<1x128xf32>
    %c4_67 = arith.constant 4 : index
    %c1_68 = arith.constant 1 : index
    %121 = memref.load %arg1[%c4_67, %c1_68] : memref<5x5xf32, #tpu.memory_space<smem>>
    %122 = vector.broadcast %121 : f32 to vector<1x128xf32>
    %123 = arith.mulf %1, %122 : vector<1x128xf32>
    %124 = arith.addf %120, %123 : vector<1x128xf32>
    %c4_69 = arith.constant 4 : index
    %c2_70 = arith.constant 2 : index
    %125 = memref.load %arg1[%c4_69, %c2_70] : memref<5x5xf32, #tpu.memory_space<smem>>
    %126 = vector.broadcast %125 : f32 to vector<1x128xf32>
    %127 = arith.mulf %2, %126 : vector<1x128xf32>
    %128 = arith.addf %124, %127 : vector<1x128xf32>
    %c4_71 = arith.constant 4 : index
    %c3_72 = arith.constant 3 : index
    %129 = memref.load %arg1[%c4_71, %c3_72] : memref<5x5xf32, #tpu.memory_space<smem>>
    %130 = vector.broadcast %129 : f32 to vector<1x128xf32>
    %131 = arith.mulf %3, %130 : vector<1x128xf32>
    %132 = arith.addf %128, %131 : vector<1x128xf32>
    %c4_73 = arith.constant 4 : index
    %c4_74 = arith.constant 4 : index
    %133 = memref.load %arg1[%c4_73, %c4_74] : memref<5x5xf32, #tpu.memory_space<smem>>
    %134 = vector.broadcast %133 : f32 to vector<1x128xf32>
    %135 = arith.mulf %4, %134 : vector<1x128xf32>
    %136 = arith.addf %132, %135 : vector<1x128xf32>
    %c0_75 = arith.constant 0 : index
    %c4_76 = arith.constant 4 : index
    %137 = memref.load %arg2[%c0_75, %c4_76] : memref<1x5xf32, #tpu.memory_space<smem>>
    %138 = vector.broadcast %137 : f32 to vector<1x128xf32>
    %139 = arith.addf %136, %138 : vector<1x128xf32>
    %cst_77 = arith.constant 0.000000e+00 : f32
    %140 = vector.broadcast %cst_77 : f32 to vector<1x128xf32>
    %141 = arith.maximumf %139, %140 : vector<1x128xf32>
    %c0_78 = arith.constant 0 : index
    %c4_79 = arith.constant 4 : index
    %142 = memref.load %arg3[%c0_78, %c4_79] : memref<1x5xf32, #tpu.memory_space<smem>>
    %143 = vector.broadcast %142 : f32 to vector<1x128xf32>
    %144 = arith.mulf %141, %143 : vector<1x128xf32>
    %145 = arith.addf %117, %144 : vector<1x128xf32>
    %c0_80 = arith.constant 0 : index
    %c0_81 = arith.constant 0 : index
    %146 = memref.load %arg4[%c0_80, %c0_81] : memref<1x1xf32, #tpu.memory_space<smem>>
    %147 = vector.broadcast %146 : f32 to vector<1x128xf32>
    %148 = arith.addf %145, %147 : vector<1x128xf32>
    %cst_82 = arith.constant 0.000000e+00 : f32
    %149 = vector.broadcast %cst_82 : f32 to vector<1x128xf32>
    %150 = arith.subf %149, %148 : vector<1x128xf32>
    %151 = math.exp %150 : vector<1x128xf32>
    %cst_83 = arith.constant 1.000000e+00 : f32
    %152 = vector.broadcast %cst_83 : f32 to vector<1x128xf32>
    %153 = arith.addf %152, %151 : vector<1x128xf32>
    %cst_84 = arith.constant 1.000000e+00 : f32
    %154 = vector.broadcast %cst_84 : f32 to vector<1x128xf32>
    %155 = arith.divf %154, %153 : vector<1x128xf32>
    %c0_85 = arith.constant 0 : index
    %c0_86 = arith.constant 0 : index
    %156 = vector.load %arg6[%c0_85, %c0_86] : memref<1x128xf32, #tpu.memory_space<vmem>>, vector<1x128xf32>
    tpu.vector_store %arg6[%c0_85, %c0_86], %155 {strides = array<i32>} : memref<1x128xf32, #tpu.memory_space<vmem>>, vector<1x128xf32>,
    return
  }
  func.func @transform_0(%arg0: i32) -> (i32, i32) {
    %c0_i32 = arith.constant 0 : i32
    %c0_i32_0 = arith.constant 0 : i32
    %c0_i32_1 = arith.constant 0 : i32
    return %c0_i32, %c0_i32_0 : i32, i32
  }
  func.func @transform_1(%arg0: i32) -> (i32, i32) {
    %c0_i32 = arith.constant 0 : i32
    %c0_i32_0 = arith.constant 0 : i32
    %c0_i32_1 = arith.constant 0 : i32
    return %c0_i32, %c0_i32_0 : i32, i32
  }
  func.func @transform_2(%arg0: i32) -> (i32, i32) {
    %c0_i32 = arith.constant 0 : i32
    %c0_i32_0 = arith.constant 0 : i32
    %c0_i32_1 = arith.constant 0 : i32
    return %c0_i32, %c0_i32_0 : i32, i32
  }
  func.func @transform_3(%arg0: i32) -> (i32, i32) {
    %c0_i32 = arith.constant 0 : i32
    %c0_i32_0 = arith.constant 0 : i32
    %c0_i32_1 = arith.constant 0 : i32
    return %c0_i32, %c0_i32_0 : i32, i32
  }
  func.func @transform_4(%arg0: i32) -> (i32, i32) {
    %c0_i32 = arith.constant 0 : i32
    %c0_i32_0 = arith.constant 0 : i32
    return %c0_i32, %arg0 : i32, i32
  }
  func.func @transform_5(%arg0: i32) -> (i32, i32) {
    %c0_i32 = arith.constant 0 : i32
    %c0_i32_0 = arith.constant 0 : i32
    return %c0_i32, %arg0 : i32, i32
  }
}

</mosaic_0001>

<bundles_post_ra>
// kernel: tpu_custom_call.1
= control target key start
LH: loop header
LB: loop body
LE: loop exit
PB: predicated region body
PF: predicated region fallthrough
CT: control target
= control target key end

     0   :  { %s1106_s0 = inlined_call_operand.hbm [shape: f32[5,5], index: 0, kind: input, shape index: {}]   ;;  %s1107_s1 = inlined_call_operand.vmem [shape: f32[1,5], index: 1, kind: input, shape index: {}]   ;;  %s1108_s2 = inlined_call_operand.vmem [shape: f32[1,5], index: 2, kind: input, shape index: {}]   ;;  %s1109_s3 = inlined_call_operand.<no memory space> [shape: f32[1,1], index: 3, kind: input, shape index: {}]   ;;  %s1110_s4 = inlined_call_operand.hbm [shape: f32[8,256], index: 4, kind: input, shape index: {}]   ;;  %s1111_s5 = inlined_call_operand.hbm [shape: f32[1,256], index: 5, kind: output, shape index: {}]  }
   0x1   :  { %10 = sst [smem:[#allocation2]] %s1109_s3 }
   0x2   :  { %11 = vsyncpa [#allocation6], 0 }
   0x3   :  { %12 = vsyncpa [#allocation7], 0 }
   0x4   :  { %13 = vsyncpa [#allocation10], 0 }
   0x5   :  { %14 = vsyncpa [#allocation4], 0 }
   0x6   :  { %16 = vsyncpa [#allocation4 + $0x1], 0 }
   0x7   :  { %17 = vsyncpa [#allocation5], 0 }
   0x8   :  { %19 = vsyncpa [#allocation5 + $0x1], 0  ;;  %s855_s20 = smov 0   ;;  %s857_s21 = smov 0  }
   0x9   :  { %s859_s22 = smov 0   ;;  %s861_s23 = smov 0  }
   0xa LB: > { %s876_s3 = sadd.s32 4294967295, %s815_s23   ;;  %s541_s24 = sadd.s32 4294967294, %s815_s23   ;;  %s815_s23 = sphi %s861_s23, %s1137_s23   ;;  %s811_s22 = sphi %s859_s22, %s1136_s22   ;;  %s807_s21 = sphi %s857_s21, %s1135_s21   ;;  %s803_s20 = sphi %s855_s20, %s1134_s20  }
   0xb   : > { %p129_p0 = scmp.ne.s32.totalorder %s807_s21, %s803_s20  ;;  %p1112_p1 = scmp.eq.s32.totalorder %s876_s3, 0 }
   0xc   : > { %p159_p3 = scmp.eq.s32.totalorder %s541_s24, 1  ;;  %p542_p5 = scmp.ge.s32.totalorder %s815_s23, 1 }
   0xd   : > { %p885_p4 = por %p1112_p1, %p129_p0  ;;  %p166_p7 = scmp.lt.s32.totalorder %s815_s23, 3 }
   0xe   : > { %p890_p6 = por %p159_p3, %p129_p0  ;;  %s188_s30 = sshll.u32 %s1107_s1, 4  ;;  %s189_s30 = int_to_ptr.vmem [resolvable:$true] %s188_s30 }
   0xf   : > { %s1116_s25 = scalar_select %p885_p4, 1, 0 }
  0x10   : > { %s1117_s26 = scalar_select %p890_p6, 1, 0 }
  0x11   : > { %p895_p8 = pnand %p542_p5, %p166_p7  ;;  %s199_s8 = sshll.u32 %s1108_s2, 4  ;;  %s200_s8 = int_to_ptr.vmem [resolvable:$true] %s199_s8 }
  0x12   : > { %s915_s10 = sadd.s32 1, %s815_s23   ;;  %s817_s11 = smov [#allocation3]  }
  0x13   : > { %s1118_s27 = scalar_select %p895_p8, 1, 0 }
  0x14   : > { %p605_p10 = pneg %p895_p8  ;;  %s681_s14 = scalar_lea.vmem %s189_s30, 16 }
  0x15   : > { %p682_p12 = scmp.ne.s32.totalorder %s189_s30, %s681_s14  ;;  %p689_p5 = scmp.lt.s32.totalorder %s189_s30, %s189_s30 }
  0x16   : > { %p910_p11 = pnand %p605_p10, %p1112_p1  ;;  %p690_p7 = scmp.lt.s32.totalorder %s681_s14, %s681_s14 }
  0x18   : > { %608 = dma.hbm_to_smem (!%p910_p11), %s1106_s0, 128, %s817_s11, [#allocation6]  }
  0x19   : > { %p683_p13 = pneg %p910_p11  ;;  %p691_p10 = por %p690_p7, %p689_p5 }
  0x1b   : > { %p684_p0 = pnand %p683_p13, %p682_p12 }
  0x1d   : > { %p685_p3 = pneg %p684_p0 }
  0x1f   : > { %p692_p9 = pnand %p691_p10, %p685_p3 }
  0x21   : > { %695 = shalt.err (!%p692_p9)
}
  0x22   : > { %s818_s15 = smov [#allocation8]   ;;  %s696_s16 = scalar_lea.vmem %s200_s8, 16 }
  0x23   : > { %611 = dma.vmem_to_smem (!%p910_p11), %s189_s30, 16, %s818_s15, [#allocation7]  }
  0x24   : > { %p697_p1 = scmp.ne.s32.totalorder %s200_s8, %s696_s16  ;;  %p704_p4 = scmp.lt.s32.totalorder %s200_s8, %s200_s8 }
  0x25   : > { %p705_p8 = scmp.lt.s32.totalorder %s696_s16, %s696_s16 }
  0x26   : > { %p699_p2 = pnand %p697_p1, %p683_p13 }
  0x27   : > { %p706_p12 = por %p705_p8, %p704_p4 }
  0x28   : > { %p700_p6 = pneg %p699_p2 }
  0x2a   : > { %p707_p0 = pnand %p706_p12, %p700_p6 }
  0x2c   : > { %710 = shalt.err (!%p707_p0)
}
  0x2d   : > { %s819_s17 = smov [#allocation9]   ;;  %s113_s18 = ssub.s32 %s815_s23, %s915_s10 }
  0x2e   : > { %614 = dma.vmem_to_smem (!%p910_p11), %s200_s8, 16, %s819_s17, [#allocation10]  }
  0x2f   : > { %s116_s19 = sadd.s32 1, %s811_s22  ;;  %p114_p1 = scmp.eq.s32.totalorder %s113_s18, 0 }
  0x30   : > { %p123_p2 = scmp.ne.s32.totalorder %s811_s22, %s807_s21  ;;  %p124_p4 = scmp.eq.s32.totalorder %s815_s23, 0 }
  0x31   : > { %p626_p6 = scmp.lt.s32.totalorder %s815_s23, 2  ;;  %p1120_p9 = scmp.eq.s32.totalorder %s876_s3, 1 }
  0x32   : > { %s936_s24 = scalar_select %p114_p1, %s811_s22, %s116_s19  }
  0x33   : > { %p125_p8 = por %p124_p4, %p123_p2  ;;  %p940_p13 = por %p1120_p9, %p123_p2 }
  0x34   : > { %s213_s29 = sand.u32 1, %s811_s22   ;;  %s548_s30 = sshll.u32 %s815_s23, 7 }
  0x35   : > { %s1121_s28 = scalar_select %p940_p13, 1, 0 }
  0x36   : > { %s547_s6 = sshll.u32 %s213_s29, 3  ;;  %s949_s8 = scalar_lea.hbm %s1110_s4, %s548_s30 }
  0x37   : > { %s217_s11 = scalar_lea.vmem [#allocation11], %s547_s6  ;;  %p951_p11 = pnand %p626_p6, %p125_p8 }
  0x38   : > { %s224_s12 = sshll.u32 %s217_s11, 4  ;;  %s214_s14 = scalar_lea.sflag [#allocation4], %s213_s29  ;;  %s225_s12 = int_to_ptr.vmem [resolvable:$true] %s224_s12 }
  0x39   : > { %s711_s15 = scalar_lea.hbm %s949_s8, 128  ;;  %p713_p5 = pneg %p951_p11 }
  0x3a   : > { %p712_p3 = scmp.ne.s32.totalorder %s949_s8, %s711_s15  ;;  %s716_s18 = scalar_lea.hbm %s1110_s4, 256 }
  0x3b   : > { %p717_p12 = scmp.lt.s32.totalorder %s949_s8, %s1110_s4  ;;  %p718_p0 = scmp.lt.s32.totalorder %s716_s18, %s711_s15 }
  0x3c   : > { %p714_p7 = pnand %p713_p5, %p712_p3 }
  0x3d   : > { %p719_p1 = por %p718_p0, %p717_p12 }
  0x3e   : > { %p715_p10 = pneg %p714_p7 }
  0x40   : > { %p720_p2 = pnand %p719_p1, %p715_p10 }
  0x42   : > { %723 = shalt.err (!%p720_p2)
}
  0x43   : > { %s724_s6 = scalar_lea.vmem %s225_s12, 128  ;;  %s820_s29 = smov [#allocation11]  }
  0x44   : > { %p725_p4 = scmp.ne.s32.totalorder %s225_s12, %s724_s6  ;;  %s729_s7 = sshll.u32 %s820_s29, 4  ;;  %s730_s7 = int_to_ptr.vmem [resolvable:$false] %s729_s7 }
  0x45   : > { %s731_s9 = scalar_lea.vmem %s730_s7, 256  ;;  %p732_p9 = scmp.lt.s32.totalorder %s225_s12, %s730_s7 }
  0x46   : > { %p727_p6 = pnand %p725_p4, %p713_p5  ;;  %p733_p3 = scmp.lt.s32.totalorder %s731_s9, %s724_s6 }
  0x48   : > { %p728_p8 = pneg %p727_p6  ;;  %p734_p7 = por %p733_p3, %p732_p9 }
  0x4a   : > { %p735_p13 = pnand %p734_p7, %p728_p8 }
  0x4c   : > { %738 = shalt.err (!%p735_p13)
}
  0x4d   : > { %618 = dma.hbm_to_vmem [thread:$0]  (!%p951_p11), %s949_s8, 128, %s225_s12, %s214_s14  }
  0x4e   : > { %p1123_p10 = scmp.ne.s32.totalorder %s1118_s27, 0 }
  0x4f   : > { %p1124_p12 = scmp.eq.s32.totalorder (!%p1123_p10), %s876_s3, 0 }
  0x50   : > { %233 = sbr.rel (%p1123_p10) target bundleno = 201 (0xc9), region = 40 }
  0x55   : > { %782 = dma.done.wait (%p1124_p12), [#allocation6], 128   ;;  %p1125_p5 = pmov %p1124_p12 }
  0x57   : > { %784 = vsyncadd (%p1125_p5), [#allocation6], 4294967168  ;;  %p1126_p0 = pmov %p1125_p5 }
  0x59   : > { %786 = dma.done.wait (%p1126_p0), [#allocation7], 16   ;;  %p1127_p1 = pmov %p1126_p0 }
  0x5a   : > { %p1128_p13 = pmov %p1126_p0 }
  0x5b   : > { %788 = vsyncadd (%p1127_p1), [#allocation7], 4294967280 }
  0x5c   : > { %790 = dma.done.wait (%p1128_p13), [#allocation10], 16   ;;  %p1129_p11 = pmov %p1126_p0 }
  0x5d   : > { %s984_s27 = sand.u32 1, %s807_s21   ;;  %p1130_p2 = scmp.ne.s32.totalorder %s1116_s25, 0 }
  0x5e   : > { %792 = vsyncadd (%p1129_p11), [#allocation10], 4294967280  ;;  %s553_s8 = sshll.u32 %s984_s27, 3  ;;  %s248_s11 = scalar_lea.sflag [#allocation4], %s984_s27 }
  0x5f   : > { %s988_s12 = scalar_lea.vmem [#allocation11], %s553_s8 }
  0x60   : > { %794 = dma.done.wait (%p1130_p2), %s248_s11, 128  }
  0x61   : > { %796 = vsyncadd (%p1130_p2), %s248_s11, 4294967168 }
  0x62   : > { %256 = sfence }
  0x63   : > { %s283_s13 = sld [smem:[#allocation3]]  ;;  %v995_v0 = vld [vmem:[%s988_s12] sm:$0x1]  ;;  %v998_v1 = vld [vmem:[%s988_s12 + $0x1] sm:$0x1]  ;;  %p1131_p6 = scmp.ne.s32.totalorder %s1121_s28, 0 }
  0x64   : > { %s554_s14 = sld [smem:[#allocation3 + $0x1]]  ;;  %v1005_v3 = vld [vmem:[%s988_s12 + $0x2] sm:$0x1]  ;;  %v1011_v10 = vld [vmem:[%s988_s12 + $0x3] sm:$0x1] }
  0x65   : > { %s555_s15 = sld [smem:[#allocation3 + $0x2]]  ;;  %v1020_v17 = vld [vmem:[%s988_s12 + $0x4] sm:$0x1] }
  0x66   : > { %s556_s16 = sld [smem:[#allocation3 + $0x3]] }
  0x67   : > { %s1000_s17 = sld [smem:[#allocation3 + $0x4]] }
  0x68   : > { %s1002_s18 = sld [smem:[#allocation8]] }
  0x69   : > { %v284_v2 = vstv %s283_s13  ;;  %s558_s25 = sld [smem:[#allocation3 + $0x80]] }
  0x6a   : > { %v285_v4 = vmul.f32 %v284_v2, %v995_v0  ;;  %v287_v5 = vstv %s554_s14  ;;  %s559_s19 = sld [smem:[#allocation3 + $0x81]] }
  0x6b   : > { %v288_v6 = vmul.f32 %v287_v5, %v998_v1  ;;  %v291_v7 = vstv %s555_s15  ;;  %s560_s30 = sld [smem:[#allocation3 + $0x82]] }
  0x6c   : > { %v292_v9 = vmul.f32 %v291_v7, %v1005_v3  ;;  %s561_s6 = sld [smem:[#allocation3 + $0x83]]  ;;  %v295_v11 = vstv %s556_s16 }
  0x6d   : > { %v289_v8 = vadd.f32 %v288_v6, %v285_v4  ;;  %s562_s29 = sld [smem:[#allocation3 + $0x84]]  ;;  %v296_v14 = vmul.f32 %v295_v11, %v1011_v10  ;;  %v299_v18 = vstv %s1000_s17 }
  0x6e   : > { %s1013_s7 = sld [smem:[#allocation9]]  ;;  %v300_v27 = vmul.f32 %v299_v18, %v1020_v17  ;;  %v303_v37 = vstv %s1002_s18 }
  0x6f   : > { %v311_v12 = vstv %s558_s25  ;;  %s1015_s9 = sld [smem:[#allocation8 + $0x1]]  ;;  %v293_v13 = vadd.f32 %v292_v9, %v289_v8 }
  0x70   : > { %v312_v15 = vmul.f32 %v311_v12, %v995_v0  ;;  %v314_v16 = vstv %s559_s19  ;;  %s565_s8 = sld [smem:[#allocation3 + $0x100]] }
  0x71   : > { %v315_v19 = vmul.f32 %v314_v16, %v998_v1  ;;  %v318_v20 = vstv %s560_s30  ;;  %s566_s11 = sld [smem:[#allocation3 + $0x101]]  ;;  %v297_v26 = vadd.f32 %v296_v14, %v293_v13 }
  0x72   : > { %v319_v21 = vmul.f32 %v318_v20, %v1005_v3  ;;  %v322_v22 = vstv %s561_s6  ;;  %s567_s13 = sld [smem:[#allocation3 + $0x102]] }
  0x73   : > { %v316_v23 = vadd.f32 %v315_v19, %v312_v15  ;;  %v323_v24 = vmul.f32 %v322_v22, %v1011_v10  ;;  %v326_v25 = vstv %s562_s29  ;;  %s568_s14 = sld [smem:[#allocation3 + $0x103]]  ;;  %v301_v34 = vadd.f32 %v300_v27, %v297_v26 }
  0x74   : > { %s569_s12 = sld [smem:[#allocation3 + $0x104]]  ;;  %v327_v29 = vmul.f32 %v326_v25, %v1020_v17  ;;  %v307_v53 = vstv %s1013_s7 }
  0x75   : > { %v320_v28 = vadd.f32 %v319_v21, %v316_v23  ;;  %s1028_s15 = sld [smem:[#allocation9 + $0x1]]  ;;  %v330_v41 = vstv %s1015_s9  ;;  %v304_v45 = vadd.f32 %v303_v37, %v301_v34 }
  0x76   : > { %v338_v30 = vstv %s565_s8  ;;  %s1030_s16 = sld [smem:[#allocation8 + $0x2]] }
  0x77   : > { %v324_v31 = vadd.f32 %v323_v24, %v320_v28  ;;  %v339_v32 = vmul.f32 %v338_v30, %v995_v0  ;;  %v341_v33 = vstv %s566_s11  ;;  %s572_s17 = sld [smem:[#allocation3 + $0x180]]  ;;  %v305_v57 = vmax.f32 %v304_v45, 0.0 }
  0x78   : > { %v342_v35 = vmul.f32 %v341_v33, %v998_v1  ;;  %v345_v36 = vstv %s567_s13  ;;  %s573_s25 = sld [smem:[#allocation3 + $0x181]] }
  0x79   : > { %v328_v38 = vadd.f32 %v327_v29, %v324_v31  ;;  %v346_v39 = vmul.f32 %v345_v36, %v1005_v3  ;;  %v349_v40 = vstv %s568_s14  ;;  %s574_s19 = sld [smem:[#allocation3 + $0x182]]  ;;  %v308_v8 = vmul.f32 %v307_v53, %v305_v57 }
  0x7a   : > { %v343_v42 = vadd.f32 %v342_v35, %v339_v32  ;;  %v350_v43 = vmul.f32 %v349_v40, %v1011_v10  ;;  %v353_v44 = vstv %s569_s12  ;;  %s575_s30 = sld [smem:[#allocation3 + $0x183]] }
  0x7b   : > { %s1038_s6 = sld [smem:[#allocation3 + $0x184]]  ;;  %v354_v47 = vmul.f32 %v353_v44, %v1020_v17  ;;  %v331_v48 = vadd.f32 %v330_v41, %v328_v38  ;;  %v334_v4 = vstv %s1028_s15 }
  0x7c   : > { %v347_v46 = vadd.f32 %v346_v39, %v343_v42  ;;  %s1041_s18 = sld [smem:[#allocation9 + $0x2]]  ;;  %v357_v54 = vstv %s1030_s16 }
  0x7d   : > { %v365_v49 = vstv %s572_s17  ;;  %s1043_s29 = sld [smem:[#allocation8 + $0x3]]  ;;  %v332_v61 = vmax.f32 %v331_v48, 0.0  ;;  %s586_s17 = sshll.u32 %s876_s3, 4 }
  0x7e   : > { %v351_v50 = vadd.f32 %v350_v43, %v347_v46  ;;  %v366_v51 = vmul.f32 %v365_v49, %v995_v0  ;;  %v368_v52 = vstv %s573_s25  ;;  %s579_s9 = sld [smem:[#allocation3 + $0x200]]  ;;  %s277_s25 = scalar_lea.vmem [#allocation12], %s984_s27 }
  0x7f   : > { %v369_v55 = vmul.f32 %v368_v52, %v998_v1  ;;  %v372_v56 = vstv %s574_s19  ;;  %s580_s8 = sld [smem:[#allocation3 + $0x201]]  ;;  %v335_v11 = vmul.f32 %v334_v4, %v332_v61  ;;  %s441_s19 = sshll.u32 %s277_s25, 4  ;;  %s442_s19 = int_to_ptr.vmem [resolvable:$true] %s441_s19 }
  0x80   : > { %v355_v58 = vadd.f32 %v354_v47, %v351_v50  ;;  %v373_v59 = vmul.f32 %v372_v56, %v1005_v3  ;;  %v376_v60 = vstv %s575_s30  ;;  %s581_s11 = sld [smem:[#allocation3 + $0x202]] }
  0x81   : > { %v370_v62 = vadd.f32 %v369_v55, %v366_v51  ;;  %v377_v63 = vmul.f32 %v376_v60, %v1011_v10  ;;  %v380_v2 = vstv %s1038_s6  ;;  %s582_s13 = sld [smem:[#allocation3 + $0x203]] }
  0x82   : > { %v358_v5 = vadd.f32 %v357_v54, %v355_v58  ;;  %s583_s7 = sld [smem:[#allocation3 + $0x204]]  ;;  %v381_v7 = vmul.f32 %v380_v2, %v1020_v17  ;;  %v361_v20 = vstv %s1041_s18  ;;  %s1069_s18 = scalar_lea.hbm %s1111_s5, %s586_s17 }
  0x83   : > { %v374_v6 = vadd.f32 %v373_v59, %v370_v62  ;;  %s1054_s14 = sld [smem:[#allocation9 + $0x3]]  ;;  %v384_v16 = vstv %s1043_s29  ;;  %s429_s29 = scalar_lea.sflag [#allocation5], %s984_s27 }
  0x84   : > { %v392_v9 = vstv %s579_s9  ;;  %s584_s12 = sld [smem:[#allocation8 + $0x4]]  ;;  %v359_v15 = vmax.f32 %v358_v5, 0.0  ;;  %s739_s9 = scalar_lea.vmem %s442_s19, 16 }
  0x85   : > { %v378_v12 = vadd.f32 %v377_v63, %v374_v6  ;;  %v393_v13 = vmul.f32 %v392_v9, %v995_v0  ;;  %v395_v14 = vstv %s580_s8  ;;  %s585_s15 = sld [smem:[#allocation9 + $0x4]]  ;;  %v336_v0 = vadd.f32 %v335_v11, %v308_v8  ;;  %p740_p4 = scmp.ne.s32.totalorder %s442_s19, %s739_s9 }
  0x86   : > { %v396_v18 = vmul.f32 %v395_v14, %v998_v1  ;;  %v399_v19 = vstv %s581_s11  ;;  %v362_v28 = vmul.f32 %v361_v20, %v359_v15  ;;  %s418_s16 = sld [smem:[#allocation2]]  ;;  %s821_s8 = smov [#allocation12]  }
  0x87   : > { %v382_v21 = vadd.f32 %v381_v7, %v378_v12  ;;  %v400_v22 = vmul.f32 %v399_v19, %v1005_v3  ;;  %v403_v23 = vstv %s582_s13  ;;  %p741_p8 = pnand %p740_p4, %p1131_p6  ;;  %s743_s11 = sshll.u32 %s821_s8, 4  ;;  %s744_s11 = int_to_ptr.vmem [resolvable:$false] %s743_s11 }
  0x88   : > { %v397_v24 = vadd.f32 %v396_v18, %v393_v13  ;;  %v404_v25 = vmul.f32 %v403_v23, %v1011_v10  ;;  %v407_v26 = vstv %s583_s7  ;;  %v363_v34 = vadd.f32 %v362_v28, %v336_v0  ;;  %s745_s3 = scalar_lea.vmem %s744_s11, 32  ;;  %p746_p3 = scmp.lt.s32.totalorder %s442_s19, %s744_s11 }
  0x89   : > { %v385_v27 = vadd.f32 %v384_v16, %v382_v21  ;;  %v408_v30 = vmul.f32 %v407_v26, %v1020_v17  ;;  %v388_v1 = vstv %s1054_s14  ;;  %p742_p9 = pneg %p741_p8  ;;  %p747_p7 = scmp.lt.s32.totalorder %s745_s3, %s739_s9 }
  0x8a   : > { %v401_v29 = vadd.f32 %v400_v22, %v397_v24  ;;  %v411_v33 = vstv %s584_s12 }
  0x8b   : > { %v386_v31 = vmax.f32 %v385_v27, 0.0  ;;  %v415_v10 = vstv %s585_s15  ;;  %p748_p10 = por %p747_p7, %p746_p3 }
  0x8c   : > { %v405_v32 = vadd.f32 %v404_v25, %v401_v29  ;;  %v419_v40 = vstv %s418_s16 }
  0x8d   : > { %v389_v35 = vmul.f32 %v388_v1, %v386_v31  ;;  %p749_p12 = pnand %p748_p10, %p742_p9 }
  0x8e   : > { %v409_v3 = vadd.f32 %v408_v30, %v405_v32 }
  0x8f   : > { %v390_v37 = vadd.f32 %v389_v35, %v363_v34 }
  0x90   : > { %v412_v36 = vadd.f32 %v411_v33, %v409_v3 }
  0x92   : > { %v413_v38 = vmax.f32 %v412_v36, 0.0 }
  0x94   : > { %v416_v39 = vmul.f32 %v415_v10, %v413_v38 }
  0x96   : > { %v417_v41 = vadd.f32 %v416_v39, %v390_v37 }
  0x98   : > { %v420_v42 = vadd.f32 %v419_v40, %v417_v41 }
  0x9a   : > { %v421_v17 = vsub.f32 0.0, %v420_v42 }
  0x9c   : > { %v422_v43 = vmul.f32 1.442695, %v421_v17 }
  0x9e   : > { %666 = vpow2.f32 %v422_v43 }
  0xab   : > { %v667_v44 = vpop.eup %666 }
  0xac   : > { %v424_v45 = vadd.f32 1.0, %v667_v44 }
  0xae   : > { %668 = vrcp.f32 %v424_v45 }
  0xbb   : > { %v669_v46 = vpop.eup %668 }
  0xbc   : > { %427 = vst [vmem:[%s277_s25] sm:$0x1] %v669_v46 }
  0xbd   : > { %752 = shalt.err (!%p749_p12)
}
  0xbe   : > { %s753_s13 = scalar_lea.hbm %s1069_s18, 16  ;;  %s757_s14 = scalar_lea.hbm %s1111_s5, 32 }
  0xbf   : > { %p754_p5 = scmp.ne.s32.totalorder %s1069_s18, %s753_s13  ;;  %p758_p13 = scmp.lt.s32.totalorder %s1069_s18, %s1111_s5 }
  0xc0   : > { %p759_p11 = scmp.lt.s32.totalorder %s757_s14, %s753_s13 }
  0xc1   : > { %p755_p0 = pnand %p754_p5, %p1131_p6 }
  0xc2   : > { %p760_p2 = por %p759_p11, %p758_p13 }
  0xc3   : > { %p756_p1 = pneg %p755_p0 }
  0xc5   : > { %p761_p4 = pnand %p760_p2, %p756_p1 }
  0xc7   : > { %764 = shalt.err (!%p761_p4)
}
  0xc8   : > { %603 = dma.vmem_to_hbm [thread:$0]  (%p1131_p6), %s442_s19, 16, %s1069_s18, %s429_s29  }
  0xc9 PF: > { %s453_s16 = sand.u32 1, %s803_s20   ;;  %p1132_p8 = scmp.ne.s32.totalorder %s1117_s26, 0 }
  0xca   : > { %p1133_p9 = scmp.ge.s32.totalorder %s815_s23, 2  ;;  %s454_s17 = scalar_lea.sflag [#allocation5], %s453_s16 }
  0xcc   : > { %p620_p3 = pnand %p1133_p9, %p1132_p8 }
  0xce   : > { %p621_p7 = pneg %p620_p3 }
  0xd0   : > { %798 = dma.done.wait (%p621_p7), %s454_s17, 16  }
  0xd1   : > { %800 = vsyncadd (%p621_p7), %s454_s17, 4294967280  ;;  %p22_p10 = scmp.ge.s32.totalorder %s915_s10, 4   ;;  %s1134_s20 = smov %s807_s21 }
  0xd2   : > { %s1135_s21 = smov %s811_s22  ;;  %s1136_s22 = smov %s936_s24 }
  0xd3   : > { %s1137_s23 = smov %s915_s10  ;;  %24 = sbr.rel (!%p22_p10) target bundleno = 10 (0xa), region = 99 }
  0xd8   :  { %458 = vsyncpa [#allocation4], 1 }
  0xd9   :  { %460 = vsyncpa [#allocation4 + $0x1], 1 }
  0xda   :  { %461 = vsyncpa [#allocation5], 1 }
  0xdb   :  { %463 = vsyncpa [#allocation5 + $0x1], 1 }
  0xdc   :  { %464 = vsyncpa [#allocation6], 1 }
  0xdd   :  { %466 = vsyncpa [#allocation6 + $0x1], 1 }
  0xde   :  { %467 = vsyncpa [#allocation7], 1 }
  0xdf   :  { %469 = vsyncpa [#allocation7 + $0x1], 1 }
  0xe0   :  { %470 = vsyncpa [#allocation10], 1 }

</bundles_post_ra>
